<compile_context>
chip_gen: v7x
topology: tpu7x:2x2x1
jax: 0.10.0
libtpu: 0.0.40
codegen_flags: <defaults>
</compile_context>

<pallas_src>
import functools

import jax
import jax.numpy as jnp
from jax.experimental import pallas as pl
from jax.experimental.pallas import tpu as pltpu


def _rob_cell_kernel(*refs, num_init_nodes, num_steps, C, compute_dtype):
    """Fully fused cell forward for one (channels, t_hw) spatial tile.

    refs = (x_0..x_{I-1},   # (Cin_i, t_hw)        f32 activations
            wpre,           # (I*C, sum Cin)       block-diag preprocess W^T (gamma folded)
            bpre,           # (I*C, 1)             preprocess biases
            winit,          # (S*C, I*C)           init-edge W^T, stacked over internal nodes
            bnode,          # (S*C, 1)             per-node beta sum over ALL incoming edges
            winter_0..S-2,  # ((S-1-j)*C, C)       internal-edge W^T from node j to later nodes
            o_ref)          # (S*C, t_hw)
    """
    I, S = num_init_nodes, num_steps
    idx = 0
    x_refs = refs[idx:idx + I]; idx += I
    wpre_ref = refs[idx]; idx += 1
    bpre_ref = refs[idx]; idx += 1
    winit_ref = refs[idx]; idx += 1
    bnode_ref = refs[idx]; idx += 1
    winter_refs = refs[idx:idx + (S - 1)]; idx += (S - 1)
    o_ref = refs[idx]
    cdt = compute_dtype

    # Preprocess (skip_connect_2 modeled as 1x1 conv + folded-BN affine):
    # single block-diagonal matmul over all init-node inputs.  The sublane
    # concat of the inputs is vreg-aligned when Cin_i % 8 == 0 (free).
    # TODO(synk): exact skip_connect_2 source unavailable; 1x1 conv + BN used.
    xcat = jnp.concatenate([x_refs[i][...] for i in range(I)], axis=0)
    pre = jnp.dot(wpre_ref[...], xcat.astype(cdt),
                  preferred_element_type=jnp.float32)
    pre = pre + bpre_ref[...]                          # (I*C, t_hw), f32

    # ReLU once per init state (f32 on VPU — keeps v5e happy), cast once.
    r_init = jnp.maximum(pre, 0.0).astype(cdt)

    # Every internal node's init-edge contributions in ONE wide matmul
    # (N = S*C, K = I*C); betas pre-summed over all incoming edges.
    partial = jnp.dot(winit_ref[...], r_init,
                      preferred_element_type=jnp.float32)
    partial = partial + bnode_ref[...]                 # (S*C, t_hw), f32

    acc = [partial[j * C:(j + 1) * C] for j in range(S)]
    nodes = []
    for j in range(S):
        node_j = acc[j]                # all earlier-node contributions applied
        nodes.append(node_j)
        if j < S - 1:
            r = jnp.maximum(node_j, 0.0).astype(cdt)
            # One matmul feeding ALL later nodes that consume node j.
            contrib = jnp.dot(winter_refs[j][...], r,
                              preferred_element_type=jnp.float32)
            for k in range(j + 1, S):
                off = (k - j - 1) * C
                acc[k] = acc[k] + contrib[off:off + C]

    # Single lane-dense store of the channel-concatenated internal nodes.
    o_ref[...] = jnp.concatenate(nodes, axis=0).astype(o_ref.dtype)


def _pick_hw_tile(hw, batch, bytes_per_lane, cap=8192,
                  vmem_budget=24 * 1024 * 1024):
    """Largest spatial (lane) tile that divides hw, is a multiple of 128 (or
    the full extent), fits a VMEM budget, and — for balanced 2-TC sharding on
    v7x — prefers >= 2 and an even total grid-step count."""
    vmem_cap = (vmem_budget // max(bytes_per_lane, 1)) // 128 * 128
    cap = max(128, min(cap, vmem_cap))
    valid = [t for t in range(1, hw + 1)
             if hw % t == 0 and (t % 128 == 0 or t == hw)]
    small = [t for t in valid if t <= cap] or [min(valid)]

    def score(t):
        steps = batch * (hw // t)
        return (steps >= 2, steps % 2 == 0, t)

    return max(small, key=score)


def rob_cell_forward(xs, wpre, bpre, winit, bnode, winter, *,
                     num_steps, num_out_channels,
                     compute_dtype=jnp.bfloat16, t_hw=None):
    """NCHW-native fused cell forward.

    xs:     list of (N, Cin_i, HW) inputs (channels-first, flattened spatial).
    wpre:   (I*C, sum Cin)  block-diagonal, gamma-folded preprocess weights^T.
    bpre:   (I*C, 1)        preprocess biases (stacked per init node).
    winit:  (S*C, I*C)      init-edge weights^T stacked over internal nodes.
    bnode:  (S*C, 1)        per-node beta sums (over every incoming edge).
    winter: list, j-th is ((S-1-j)*C, C): weights^T from internal node j to
            all later internal nodes.
    Returns (N, S*C, HW).
    """
    I = len(xs)
    S = num_steps
    C = num_out_channels
    N, _, HW = xs[0].shape
    cin_sum = sum(int(x.shape[1]) for x in xs)
    if t_hw is None:
        # f32 in + f32 out per lane column, double-buffered.
        bytes_per_lane = (cin_sum + S * C) * xs[0].dtype.itemsize * 2
        t_hw = _pick_hw_tile(HW, N, bytes_per_lane)
    assert HW % t_hw == 0

    def act_spec(cin):
        return pl.BlockSpec((None, cin, t_hw), lambda b, j: (b, 0, j))

    def resident_spec(arr):
        # Grid-invariant block index -> weights stay resident in VMEM.
        r, c = arr.shape
        return pl.BlockSpec((r, c), lambda b, j: (0, 0))

    in_specs = ([act_spec(int(x.shape[1])) for x in xs]
                + [resident_spec(wpre), resident_spec(bpre),
                   resident_spec(winit), resident_spec(bnode)]
                + [resident_spec(w) for w in winter])

    kernel = functools.partial(
        _rob_cell_kernel, num_init_nodes=I, num_steps=S, C=C,
        compute_dtype=compute_dtype)

    return pl.pallas_call(
        kernel,
        out_shape=jax.ShapeDtypeStruct((N, S * C, HW), xs[0].dtype),
        grid_spec=pltpu.PrefetchScalarGridSpec(
            num_scalar_prefetch=0,
            grid=(N, HW // t_hw),
            in_specs=in_specs,
            out_specs=pl.BlockSpec((None, S * C, t_hw),
                                   lambda b, j: (b, 0, j)),
        ),
        compiler_params=pltpu.CompilerParams(
            dimension_semantics=("parallel", "parallel"),
            vmem_limit_bytes=64 * 1024 * 1024),
    )(*xs, wpre, bpre, winit, bnode, *winter)


class RobSharedCellPallas:
    """JAX/Pallas port of RobSharedCell.forward for a stride-1 (normal) cell.

    Edge structure mirrors the PyTorch module:
      edges exist for from_ in [0, num_nodes), to_ in [max(init, from_+1), num_nodes)
      node(to_) = sum_{from_ < to_} edge[from_][to_](state[from_], genotype[to_][from_])
      output    = concat(states[num_init_nodes:], channel dim)
    """

    def __init__(self, key, num_input_channels, num_out_channels,
                 num_init_nodes=2, num_steps=2, num_primitives=4, stride=1,
                 compute_dtype=jnp.bfloat16):
        # TODO(synk): stride != 1 (reduce cell) would need factorized-reduce /
        # strided-conv preprocess and strided edge ops; only stride=1 is built.
        assert stride == 1
        self.num_init_nodes = num_init_nodes
        self.num_steps = num_steps
        self.num_nodes = num_init_nodes + num_steps
        self.num_out_channels = num_out_channels
        self.stride = stride
        self.compute_dtype = compute_dtype
        self._weight_cache = {}

        keys = iter(jax.random.split(key, 128))

        # Preprocess ops: skip_connect_2(C=prev_c, C_out, stride=1, affine).
        # TODO(synk): modeled as channel-projecting 1x1 conv + folded-BN
        # affine (no ReLU); exact skip_connect_2 source unavailable.
        self.pre_w, self.pre_g, self.pre_b = [], [], []
        for cin in num_input_channels:
            scale = cin ** -0.5
            self.pre_w.append(
                jax.random.normal(next(keys), (cin, num_out_channels),
                                  jnp.float32) * scale)
            self.pre_g.append(jnp.ones((1, num_out_channels), jnp.float32))
            self.pre_b.append(jnp.zeros((1, num_out_channels), jnp.float32))

        # Shared edge ops: each edge holds `num_primitives` candidate
        # ReLU-Conv1x1-BN weight sets; genotype picks one per edge.
        # TODO(synk): actual primitive list of the robustness search space is
        # not in the provided source; every primitive is a 1x1 ReLUConvBN.
        self.edge_w, self.edge_g, self.edge_b = {}, {}, {}
        C = num_out_channels
        for from_ in range(self.num_nodes):
            for to_ in range(max(self.num_init_nodes, from_ + 1),
                             self.num_nodes):
                self.edge_w[(from_, to_)] = (
                    jax.random.normal(next(keys), (num_primitives, C, C),
                                      jnp.float32) * (C ** -0.5))
                self.edge_g[(from_, to_)] = jnp.ones(
                    (num_primitives, 1, C), jnp.float32)
                self.edge_b[(from_, to_)] = jnp.zeros(
                    (num_primitives, 1, C), jnp.float32)

    def _prepare_weights(self, gkey):
        """Fold BN, transpose to channels-out-major, stack per node.  Cached
        per genotype so repeated forwards do no weight prep at all."""
        if gkey in self._weight_cache:
            return self._weight_cache[gkey]
        C = self.num_out_channels
        I, S = self.num_init_nodes, self.num_steps
        cdt = self.compute_dtype

        # Preprocess: block-diagonal (I*C, sum Cin) gamma-folded W^T.
        cins = [int(w.shape[0]) for w in self.pre_w]
        total_cin = sum(cins)
        wpre = jnp.zeros((I * C, total_cin), jnp.float32)
        off = 0
        for i, cin in enumerate(cins):
            wT = (self.pre_w[i] * self.pre_g[i]).T           # (C, cin)
            wpre = wpre.at[i * C:(i + 1) * C, off:off + cin].set(wT)
            off += cin
        wpre = wpre.astype(cdt)
        bpre = jnp.concatenate([b.T for b in self.pre_b], axis=0)   # (I*C, 1)

        # Init-edge weights (all nodes, one wide matmul) + summed betas.
        winit_rows, bnode_rows = [], []
        for to_ in range(I, I + S):
            w_row = []
            b_sum = jnp.zeros((C, 1), jnp.float32)
            for f in range(I):
                prim = gkey[to_][f]
                w_row.append((self.edge_w[(f, to_)][prim]
                              * self.edge_g[(f, to_)][prim]).T)
            for f in range(to_):
                prim = gkey[to_][f]
                b_sum = b_sum + self.edge_b[(f, to_)][prim].T
            winit_rows.append(jnp.concatenate(w_row, axis=1))   # (C, I*C)
            bnode_rows.append(b_sum)
        winit = jnp.concatenate(winit_rows, axis=0).astype(cdt)  # (S*C, I*C)
        bnode = jnp.concatenate(bnode_rows, axis=0)              # (S*C, 1)

        # Internal->internal edge weights, batched over all later consumers.
        winter = []
        for j in range(S - 1):
            from_node = I + j
            blocks = []
            for k in range(j + 1, S):
                to_node = I + k
                prim = gkey[to_node][from_node]
                blocks.append((self.edge_w[(from_node, to_node)][prim]
                               * self.edge_g[(from_node, to_node)][prim]).T)
            winter.append(jnp.concatenate(blocks, axis=0).astype(cdt))

        prepared = (wpre, bpre, winit, bnode, tuple(winter))
        self._weight_cache[gkey] = prepared
        return prepared

    def __call__(self, inputs, genotype):
        # inputs: list of NCHW arrays (one per init node).
        N = inputs[0].shape[0]
        H, W = inputs[0].shape[2], inputs[0].shape[3]
        C = self.num_out_channels
        gkey = tuple(tuple(int(v) for v in row) for row in genotype)
        wpre, bpre, winit, bnode, winter = self._prepare_weights(gkey)

        # NCHW-native: pure reshape (no transpose, no extra HBM traffic).
        xs = [x.reshape(x.shape[0], x.shape[1], H * W) for x in inputs]
        out = rob_cell_forward(xs, wpre, bpre, winit, bnode, list(winter),
                               num_steps=self.num_steps, num_out_channels=C,
                               compute_dtype=self.compute_dtype)
        return out.reshape(N, self.num_steps * C,
                           H // self.stride, W // self.stride)


def _reference_forward(cell, inputs, genotype):
    """Pure-JAX f32 reference with the same (approximated) semantics."""
    N, _, H, W = inputs[0].shape
    C = cell.num_out_channels
    states = []
    for i, x in enumerate(inputs):
        y = jnp.einsum('nchw,cd->ndhw', x, cell.pre_w[i])
        g = cell.pre_g[i].reshape(1, C, 1, 1)
        b = cell.pre_b[i].reshape(1, C, 1, 1)
        states.append(y * g + b)
    for to_ in range(cell.num_init_nodes, cell.num_nodes):
        acc = jnp.zeros((N, C, H, W), jnp.float32)
        for f in range(to_):
            prim = int(genotype[to_][f])
            y = jnp.einsum('nchw,cd->ndhw', jnp.maximum(states[f], 0.0),
                           cell.edge_w[(f, to_)][prim])
            g = cell.edge_g[(f, to_)][prim].reshape(1, C, 1, 1)
            b = cell.edge_b[(f, to_)][prim].reshape(1, C, 1, 1)
            acc = acc + y * g + b
        states.append(acc)
    return jnp.concatenate(states[cell.num_init_nodes:], axis=1)


if __name__ == "__main__":
    key = jax.random.PRNGKey(0)
    k_params, k_in0, k_in1 = jax.random.split(key, 3)

    B, C_in, H, W = 2, 16, 16, 16
    C_out = 32
    num_init_nodes, num_steps = 2, 2

    # Same PRNG key -> identical parameters in both cells.
    cell_bf16 = RobSharedCellPallas(k_params, (C_in, C_in), C_out,
                                    num_init_nodes=num_init_nodes,
                                    num_steps=num_steps, num_primitives=4,
                                    stride=1, compute_dtype=jnp.bfloat16)
    cell_f32 = RobSharedCellPallas(k_params, (C_in, C_in), C_out,
                                   num_init_nodes=num_init_nodes,
                                   num_steps=num_steps, num_primitives=4,
                                   stride=1, compute_dtype=jnp.float32)

    x0 = jax.random.normal(k_in0, (B, C_in, H, W), jnp.float32)
    x1 = jax.random.normal(k_in1, (B, C_in, H, W), jnp.float32)

    # genotype[to_][from_] = primitive index (static per forward, as in torch).
    genotype = [
        [0, 0, 0, 0],
        [0, 0, 0, 0],
        [1, 2, 0, 0],   # node 2: edges from 0, 1
        [3, 0, 2, 0],   # node 3: edges from 0, 1, 2
    ]

    ref = jax.block_until_ready(_reference_forward(cell_f32, [x0, x1], genotype))
    ref_scale = max(1.0, float(jnp.max(jnp.abs(ref))))

    # f32 path: tight check against the f32 reference.
    out32 = jax.block_until_ready(cell_f32([x0, x1], genotype))
    assert out32.shape == (B, num_steps * C_out, H, W), out32.shape
    assert out32.dtype == jnp.float32
    err32 = float(jnp.max(jnp.abs(out32 - ref)))
    assert err32 < 2e-3, f"f32 max abs error {err32}"

    # bf16 (default) path: loose check — MXU inputs are bf16, accumulation f32.
    out16 = jax.block_until_ready(cell_bf16([x0, x1], genotype))
    assert out16.shape == (B, num_steps * C_out, H, W), out16.shape
    err16 = float(jnp.max(jnp.abs(out16 - ref)))
    assert err16 < 5e-2 * ref_scale, f"bf16 max abs error {err16}"

    print("KERNEL_OK")
</pallas_src>

<mosaic_0001>
module attributes {stable_mosaic.version = 11 : i64} {
  func.func @_rob_cell_kernel(%arg0: i32, %arg1: i32, %arg2: memref<1x16x256xf32, #tpu.memory_space<vmem>>, %arg3: memref<1x16x256xf32, #tpu.memory_space<vmem>>, %arg4: memref<64x32xf32, #tpu.memory_space<vmem>>, %arg5: memref<64x1xf32, #tpu.memory_space<vmem>>, %arg6: memref<64x64xf32, #tpu.memory_space<vmem>>, %arg7: memref<64x1xf32, #tpu.memory_space<vmem>>, %arg8: memref<32x32xf32, #tpu.memory_space<vmem>>, %arg9: memref<1x64x256xf32, #tpu.memory_space<vmem>>) attributes {dimension_semantics = [#tpu.dimension_semantics<parallel>, #tpu.dimension_semantics<parallel>], iteration_bounds = array<i64: 2, 1>, scalar_prefetch = 0 : i64, scratch_operands = 0 : i64, tpu.core_type = #tpu.core_type<tc>, window_params = [{transform_indices = @transform_0, window_bounds = array<i64: 1, 16, 256>}, {transform_indices = @transform_1, window_bounds = array<i64: 1, 16, 256>}, {pipeline_mode = #tpu.pipeline_mode<synchronous>, transform_indices = @transform_2, window_bounds = array<i64: 64, 32>}, {pipeline_mode = #tpu.pipeline_mode<synchronous>, transform_indices = @transform_3, window_bounds = array<i64: 64, 1>}, {pipeline_mode = #tpu.pipeline_mode<synchronous>, transform_indices = @transform_4, window_bounds = array<i64: 64, 64>}, {pipeline_mode = #tpu.pipeline_mode<synchronous>, transform_indices = @transform_5, window_bounds = array<i64: 64, 1>}, {pipeline_mode = #tpu.pipeline_mode<synchronous>, transform_indices = @transform_6, window_bounds = array<i64: 32, 32>}, {transform_indices = @transform_7, window_bounds = array<i64: 1, 64, 256>}]} {
    %c0 = arith.constant 0 : index
    %c0_0 = arith.constant 0 : index
    %c0_1 = arith.constant 0 : index
    %0 = vector.load %arg2[%c0, %c0_0, %c0_1] : memref<1x16x256xf32, #tpu.memory_space<vmem>>, vector<1x16x256xf32>
    %1 = vector.shape_cast %0 : vector<1x16x256xf32> to vector<16x256xf32>
    %c0_2 = arith.constant 0 : index
    %c0_3 = arith.constant 0 : index
    %c0_4 = arith.constant 0 : index
    %2 = vector.load %arg3[%c0_2, %c0_3, %c0_4] : memref<1x16x256xf32, #tpu.memory_space<vmem>>, vector<1x16x256xf32>
    %3 = vector.shape_cast %2 : vector<1x16x256xf32> to vector<16x256xf32>
    %4 = tpu.concatenate %1, %3 in 0 : vector<16x256xf32>, vector<16x256xf32> -> vector<32x256xf32>
    %c0_5 = arith.constant 0 : index
    %c0_6 = arith.constant 0 : index
    %5 = vector.load %arg4[%c0_5, %c0_6] : memref<64x32xf32, #tpu.memory_space<vmem>>, vector<64x32xf32>
    %cst = arith.constant dense<0.000000e+00> : vector<64x256xf32>
    %6 = tpu.matmul %5, %4, %cst {dimension_numbers = #tpu.dot_dimension_numbers<[1], [0], [0], [1], [0, 0, 1, 1], [], []>} : vector<64x32xf32>, vector<32x256xf32>, vector<64x256xf32> -> vector<64x256xf32>
    %c0_7 = arith.constant 0 : index
    %c0_8 = arith.constant 0 : index
    %7 = vector.load %arg5[%c0_7, %c0_8] : memref<64x1xf32, #tpu.memory_space<vmem>>, vector<64x1xf32>
    %8 = vector.broadcast %7 : vector<64x1xf32> to vector<64x256xf32>
    %9 = arith.addf %6, %8 : vector<64x256xf32>
    %cst_9 = arith.constant 0.000000e+00 : f32
    %10 = vector.broadcast %cst_9 : f32 to vector<64x256xf32>
    %11 = arith.maximumf %9, %10 : vector<64x256xf32>
    %c0_10 = arith.constant 0 : index
    %c0_11 = arith.constant 0 : index
    %12 = vector.load %arg6[%c0_10, %c0_11] : memref<64x64xf32, #tpu.memory_space<vmem>>, vector<64x64xf32>
    %cst_12 = arith.constant dense<0.000000e+00> : vector<64x256xf32>
    %13 = tpu.matmul %12, %11, %cst_12 {dimension_numbers = #tpu.dot_dimension_numbers<[1], [0], [0], [1], [0, 0, 1, 1], [], []>} : vector<64x64xf32>, vector<64x256xf32>, vector<64x256xf32> -> vector<64x256xf32>
    %c0_13 = arith.constant 0 : index
    %c0_14 = arith.constant 0 : index
    %14 = vector.load %arg7[%c0_13, %c0_14] : memref<64x1xf32, #tpu.memory_space<vmem>>, vector<64x1xf32>
    %15 = vector.broadcast %14 : vector<64x1xf32> to vector<64x256xf32>
    %16 = arith.addf %13, %15 : vector<64x256xf32>
    %17 = vector.extract_strided_slice %16 {offsets = [0, 0], sizes = [32, 256], strides = [1, 1]} : vector<64x256xf32> to vector<32x256xf32>
    %18 = vector.extract_strided_slice %16 {offsets = [32, 0], sizes = [32, 256], strides = [1, 1]} : vector<64x256xf32> to vector<32x256xf32>
    %cst_15 = arith.constant 0.000000e+00 : f32
    %19 = vector.broadcast %cst_15 : f32 to vector<32x256xf32>
    %20 = arith.maximumf %17, %19 : vector<32x256xf32>
    %c0_16 = arith.constant 0 : index
    %c0_17 = arith.constant 0 : index
    %21 = vector.load %arg8[%c0_16, %c0_17] : memref<32x32xf32, #tpu.memory_space<vmem>>, vector<32x32xf32>
    %cst_18 = arith.constant dense<0.000000e+00> : vector<32x256xf32>
    %22 = tpu.matmul %21, %20, %cst_18 {dimension_numbers = #tpu.dot_dimension_numbers<[1], [0], [0], [1], [0, 0, 1, 1], [], []>} : vector<32x32xf32>, vector<32x256xf32>, vector<32x256xf32> -> vector<32x256xf32>
    %23 = arith.addf %18, %22 : vector<32x256xf32>
    %24 = tpu.concatenate %17, %23 in 0 : vector<32x256xf32>, vector<32x256xf32> -> vector<64x256xf32>
    %c0_19 = arith.constant 0 : index
    %c0_20 = arith.constant 0 : index
    %c0_21 = arith.constant 0 : index
    %25 = vector.load %arg9[%c0_19, %c0_20, %c0_21] : memref<1x64x256xf32, #tpu.memory_space<vmem>>, vector<1x64x256xf32>
    %26 = vector.shape_cast %25 : vector<1x64x256xf32> to vector<64x256xf32>
    %27 = vector.shape_cast %24 : vector<64x256xf32> to vector<1x64x256xf32>
    tpu.vector_store %arg9[%c0_19, %c0_20, %c0_21], %27 {strides = array<i32>} : memref<1x64x256xf32, #tpu.memory_space<vmem>>, vector<1x64x256xf32>,
    return
  }
  func.func @transform_0(%arg0: i32, %arg1: i32) -> (i32, i32, i32) {
    %c0_i32 = arith.constant 0 : i32
    %c0_i32_0 = arith.constant 0 : i32
    return %arg0, %c0_i32, %arg1 : i32, i32, i32
  }
  func.func @transform_1(%arg0: i32, %arg1: i32) -> (i32, i32, i32) {
    %c0_i32 = arith.constant 0 : i32
    %c0_i32_0 = arith.constant 0 : i32
    return %arg0, %c0_i32, %arg1 : i32, i32, i32
  }
  func.func @transform_2(%arg0: i32, %arg1: i32) -> (i32, i32) {
    %c0_i32 = arith.constant 0 : i32
    %c0_i32_0 = arith.constant 0 : i32
    %c0_i32_1 = arith.constant 0 : i32
    return %c0_i32, %c0_i32_0 : i32, i32
  }
  func.func @transform_3(%arg0: i32, %arg1: i32) -> (i32, i32) {
    %c0_i32 = arith.constant 0 : i32
    %c0_i32_0 = arith.constant 0 : i32
    %c0_i32_1 = arith.constant 0 : i32
    return %c0_i32, %c0_i32_0 : i32, i32
  }
  func.func @transform_4(%arg0: i32, %arg1: i32) -> (i32, i32) {
    %c0_i32 = arith.constant 0 : i32
    %c0_i32_0 = arith.constant 0 : i32
    %c0_i32_1 = arith.constant 0 : i32
    return %c0_i32, %c0_i32_0 : i32, i32
  }
  func.func @transform_5(%arg0: i32, %arg1: i32) -> (i32, i32) {
    %c0_i32 = arith.constant 0 : i32
    %c0_i32_0 = arith.constant 0 : i32
    %c0_i32_1 = arith.constant 0 : i32
    return %c0_i32, %c0_i32_0 : i32, i32
  }
  func.func @transform_6(%arg0: i32, %arg1: i32) -> (i32, i32) {
    %c0_i32 = arith.constant 0 : i32
    %c0_i32_0 = arith.constant 0 : i32
    %c0_i32_1 = arith.constant 0 : i32
    return %c0_i32, %c0_i32_0 : i32, i32
  }
  func.func @transform_7(%arg0: i32, %arg1: i32) -> (i32, i32, i32) {
    %c0_i32 = arith.constant 0 : i32
    %c0_i32_0 = arith.constant 0 : i32
    return %arg0, %c0_i32, %arg1 : i32, i32, i32
  }
}

</mosaic_0001>

<bundles_post_ra>
// kernel: tpu_custom_call.1
= control target key start
LH: loop header
LB: loop body
LE: loop exit
PB: predicated region body
PF: predicated region fallthrough
CT: control target
= control target key end

     0   :  { %s2197_s0 = inlined_call_operand.hbm [shape: f32[2,16,256], index: 0, kind: input, shape index: {}]   ;;  %s2198_s1 = inlined_call_operand.hbm [shape: f32[2,16,256], index: 1, kind: input, shape index: {}]   ;;  %s2199_s2 = inlined_call_operand.hbm [shape: f32[64,32], index: 2, kind: input, shape index: {}]   ;;  %s2200_s3 = inlined_call_operand.hbm [shape: f32[64,1], index: 3, kind: input, shape index: {}]   ;;  %s2201_s4 = inlined_call_operand.hbm [shape: f32[64,64], index: 4, kind: input, shape index: {}]   ;;  %s2202_s5 = inlined_call_operand.hbm [shape: f32[64,1], index: 5, kind: input, shape index: {}]   ;;  %s2203_s6 = inlined_call_operand.hbm [shape: f32[32,32], index: 6, kind: input, shape index: {}]   ;;  %s2204_s7 = inlined_call_operand.hbm [shape: f32[2,64,256], index: 7, kind: output, shape index: {}]  }
   0x1   :  { %2210 = sst [smem:[#allocation21_spill]] %s2197_s0 }
   0x2   :  { %2211 = sst [smem:[#allocation22_spill]] %s2199_s2 }
   0x3   :  { %2212 = sst [smem:[#allocation23_spill]] %s2200_s3 }
   0x4   :  { %2213 = sst [smem:[#allocation24_spill]] %s2201_s4 }
   0x5   :  { %2214 = sst [smem:[#allocation25_spill]] %s2202_s5 }
   0x6   :  { %2215 = sst [smem:[#allocation26_spill]] %s2204_s7 }
   0x7   :  { %12 = vsyncpa [#allocation3], 0 }
   0x8   :  { %14 = vsyncpa [#allocation3 + $0x1], 0 }
   0x9   :  { %15 = vsyncpa [#allocation6], 0 }
   0xa   :  { %17 = vsyncpa [#allocation6 + $0x1], 0 }
   0xb   :  { %18 = vsyncpa [#allocation9], 0 }
   0xc   :  { %19 = vsyncpa [#allocation12], 0 }
   0xd   :  { %20 = vsyncpa [#allocation4], 0 }
   0xe   :  { %22 = vsyncpa [#allocation4 + $0x1], 0  ;;  %s1751_s24 = smov 0   ;;  %s1753_s25 = smov 0  }
   0xf   :  { %s1755_s26 = smov 0   ;;  %s1757_s27 = smov 0  }
  0x10   :  { %s1759_s28 = smov 0   ;;  %s1761_s29 = smov 0  }
  0x11 LB: > { %s1782_s30 = sadd.s32 4294967295, %s1693_s29   ;;  %p1161_p0 = scmp.ge.s32.totalorder %s1693_s29, 1  ;;  %s1693_s29 = sphi %s1761_s29, %s28_s29   ;;  %s1689_s28 = sphi %s1759_s28, %s2246_s28   ;;  %s1685_s27 = sphi %s1757_s27, %s2245_s27   ;;  %s1681_s26 = sphi %s1755_s26, %s2244_s26   ;;  %s1677_s25 = sphi %s1753_s25, %s2243_s25   ;;  %s1673_s24 = sphi %s1751_s24, %s2242_s24  }
  0x12   : > { %p2206_p1 = scmp.eq.s32.totalorder %s1782_s30, 0  ;;  %p234_p2 = scmp.lt.s32.totalorder %s1693_s29, 3 }
  0x13   : > { %s1695_s9 = smov [#allocation7]   ;;  %s1696_s12 = smov [#allocation8]  }
  0x14   : > { %p1787_p3 = pnand %p1161_p0, %p234_p2  ;;  %s246_s10 = sshll.u32 %s1695_s9, 4  ;;  %s1791_s10 = int_to_ptr.vmem [resolvable:$true] %s246_s10 }
  0x15   : > { %s259_s13 = sshll.u32 %s1696_s12, 4  ;;  %s1697_s14 = smov [#allocation11]   ;;  %s1802_s13 = int_to_ptr.vmem [resolvable:$true] %s259_s13 }
  0x16   : > { %s2216_s8 = scalar_select %p1787_p3, 1, 0 }
  0x17   : > { %p1293_p4 = pneg %p1787_p3  ;;  %s1804_s15 = sshll.u32 %s1697_s14, 4  ;;  %s286_s15 = int_to_ptr.vmem [resolvable:$true] %s1804_s15 }
  0x18   : > { %s2218_s2 = sld [smem:[#allocation22_spill]] }
  0x19   : > { %p1798_p6 = pnand %p1293_p4, %p2206_p1 }
  0x1b   : > { %p1814_p8 = pneg %p1798_p6 }
  0x1e   : > { %s1395_s18 = scalar_lea.hbm %s2218_s2, 1024 }
  0x1f   : > { %p1396_p7 = scmp.ne.s32.totalorder %s2218_s2, %s1395_s18  ;;  %p1402_p11 = scmp.lt.u32.totalorder %s1395_s18, %s2218_s2 }
  0x21   : > { %p1398_p9 = pnand %p1814_p8, %p1396_p7 }
  0x23   : > { %p1399_p10 = pneg %p1398_p9 }
  0x25   : > { %p1404_p12 = pnand %p1402_p11, %p1399_p10 }
  0x27   : > { %1407 = shalt.err (!%p1404_p12)
}
  0x28   : > { %s1408_s9 = scalar_lea.vmem %s1791_s10, 1024  ;;  %p1416_p4 = scmp.lt.s32.totalorder %s1791_s10, %s1791_s10 }
  0x29   : > { %p1409_p13 = scmp.ne.s32.totalorder %s1791_s10, %s1408_s9  ;;  %p1417_p5 = scmp.lt.s32.totalorder %s1408_s9, %s1408_s9 }
  0x2b   : > { %p1411_p0 = pnand %p1409_p13, %p1814_p8  ;;  %p1418_p7 = por %p1417_p5, %p1416_p4 }
  0x2d   : > { %p1412_p2 = pneg %p1411_p0 }
  0x2f   : > { %p1419_p9 = pnand %p1418_p7, %p1412_p2 }
  0x31   : > { %1422 = shalt.err (!%p1419_p9)
}
  0x32   : > { %s1698_s12 = smov 128   ;;  %s1699_s14 = smov 8  }
  0x33   : > { %1296 = dma.hbm_to_vmem [thread:$0]  (!%p1798_p6), %s2218_s2, 1024, %s1791_s10, [#allocation6], %s1698_s12, %s1698_s12, %s1699_s14  }
  0x34   : > { %s2220_s3 = sld [smem:[#allocation23_spill]] }
  0x3a   : > { %s1423_s20 = scalar_lea.hbm %s2220_s3, 1024 }
  0x3b   : > { %p1424_p5 = scmp.ne.s32.totalorder %s2220_s3, %s1423_s20  ;;  %p1430_p12 = scmp.lt.u32.totalorder %s1423_s20, %s2220_s3 }
  0x3d   : > { %p1426_p10 = pnand %p1424_p5, %p1814_p8 }
  0x3f   : > { %p1427_p11 = pneg %p1426_p10 }
  0x41   : > { %p1432_p13 = pnand %p1430_p12, %p1427_p11 }
  0x43   : > { %1435 = shalt.err (!%p1432_p13)
}
  0x44   : > { %s1436_s10 = scalar_lea.vmem %s1802_s13, 1024  ;;  %p1444_p7 = scmp.lt.s32.totalorder %s1802_s13, %s1802_s13 }
  0x45   : > { %p1437_p0 = scmp.ne.s32.totalorder %s1802_s13, %s1436_s10  ;;  %p1445_p9 = scmp.lt.s32.totalorder %s1436_s10, %s1436_s10 }
  0x47   : > { %p1439_p2 = pnand %p1437_p0, %p1814_p8  ;;  %p1446_p5 = por %p1445_p9, %p1444_p7 }
  0x49   : > { %p1440_p4 = pneg %p1439_p2 }
  0x4b   : > { %p1447_p10 = pnand %p1446_p5, %p1440_p4 }
  0x4d   : > { %1450 = shalt.err (!%p1447_p10)
}
  0x4e   : > { %1299 = dma.hbm_to_vmem [thread:$0]  (!%p1798_p6), %s2220_s3, 1024, %s1802_s13, [#allocation9], %s1698_s12, %s1698_s12, %s1699_s14  }
  0x4f   : > { %s2221_s5 = sld [smem:[#allocation25_spill]] }
  0x55   : > { %s1451_s19 = scalar_lea.hbm %s2221_s5, 1024 }
  0x56   : > { %p1452_p11 = scmp.ne.s32.totalorder %s2221_s5, %s1451_s19  ;;  %p1458_p0 = scmp.lt.u32.totalorder %s1451_s19, %s2221_s5 }
  0x58   : > { %p1454_p12 = pnand %p1452_p11, %p1814_p8 }
  0x5a   : > { %p1455_p13 = pneg %p1454_p12 }
  0x5c   : > { %p1460_p2 = pnand %p1458_p0, %p1455_p13 }
  0x5e   : > { %1463 = shalt.err (!%p1460_p2)
}
  0x5f   : > { %s1464_s10 = scalar_lea.vmem %s286_s15, 1024  ;;  %p1472_p5 = scmp.lt.s32.totalorder %s286_s15, %s286_s15 }
  0x60   : > { %p1465_p4 = scmp.ne.s32.totalorder %s286_s15, %s1464_s10  ;;  %p1473_p10 = scmp.lt.s32.totalorder %s1464_s10, %s1464_s10 }
  0x62   : > { %p1467_p7 = pnand %p1465_p4, %p1814_p8  ;;  %p1474_p1 = por %p1473_p10, %p1472_p5 }
  0x64   : > { %p1468_p9 = pneg %p1467_p7 }
  0x66   : > { %p1475_p3 = pnand %p1474_p1, %p1468_p9 }
  0x68   : > { %1478 = shalt.err (!%p1475_p3)
}
  0x69   : > { %1305 = dma.hbm_to_vmem [thread:$0]  (!%p1798_p6), %s2221_s5, 1024, %s286_s15, [#allocation12], %s1698_s12, %s1698_s12, %s1699_s14  }
  0x6a   : > { %s1700_s16 = smov [#allocation10]   ;;  %s1701_s18 = smov [#allocation13]  }
  0x6b   : > { %s272_s17 = sshll.u32 %s1700_s16, 4  ;;  %s298_s19 = sshll.u32 %s1701_s18, 4  ;;  %s273_s17 = int_to_ptr.vmem [resolvable:$true] %s272_s17  ;;  %s299_s19 = int_to_ptr.vmem [resolvable:$true] %s298_s19 }
  0x6c   : > { %s2222_s4 = sld [smem:[#allocation24_spill]] }
  0x72   : > { %s1479_s23 = scalar_lea.hbm %s2222_s4, 1024 }
  0x73   : > { %p1480_p1 = scmp.ne.s32.totalorder %s2222_s4, %s1479_s23  ;;  %p1486_p12 = scmp.lt.u32.totalorder %s1479_s23, %s2222_s4 }
  0x75   : > { %p1482_p3 = pnand %p1480_p1, %p1814_p8 }
  0x77   : > { %p1483_p11 = pneg %p1482_p3 }
  0x79   : > { %p1488_p13 = pnand %p1486_p12, %p1483_p11 }
  0x7b   : > { %1491 = shalt.err (!%p1488_p13)
}
  0x7c   : > { %s1492_s15 = scalar_lea.vmem %s273_s17, 1024  ;;  %p1500_p7 = scmp.lt.s32.totalorder %s273_s17, %s273_s17 }
  0x7d   : > { %p1493_p0 = scmp.ne.s32.totalorder %s273_s17, %s1492_s15  ;;  %p1501_p9 = scmp.lt.s32.totalorder %s1492_s15, %s1492_s15 }
  0x7f   : > { %p1495_p2 = pnand %p1493_p0, %p1814_p8  ;;  %p1502_p5 = por %p1501_p9, %p1500_p7 }
  0x81   : > { %p1496_p4 = pneg %p1495_p2 }
  0x83   : > { %p1503_p10 = pnand %p1502_p5, %p1496_p4 }
  0x85   : > { %1506 = shalt.err (!%p1503_p10)
}
  0x86   : > { %1302 = dma.hbm_to_vmem [thread:$0]  (!%p1798_p6), %s2222_s4, 1024, %s273_s17, [#allocation9], %s1698_s12, %s1698_s12, %s1699_s14  }
  0x87   : > { %s1507_s20 = scalar_lea.hbm %s2203_s6, 512 }
  0x88   : > { %p1508_p1 = scmp.ne.s32.totalorder %s2203_s6, %s1507_s20  ;;  %p1514_p12 = scmp.lt.u32.totalorder %s1507_s20, %s2203_s6 }
  0x8a   : > { %p1510_p3 = pnand %p1508_p1, %p1814_p8 }
  0x8c   : > { %p1511_p11 = pneg %p1510_p3 }
  0x8e   : > { %p1516_p13 = pnand %p1514_p12, %p1511_p11 }
  0x90   : > { %1519 = shalt.err (!%p1516_p13)
}
  0x91   : > { %s1520_s13 = scalar_lea.vmem %s299_s19, 512  ;;  %p1528_p7 = scmp.lt.s32.totalorder %s299_s19, %s299_s19 }
  0x92   : > { %p1521_p0 = scmp.ne.s32.totalorder %s299_s19, %s1520_s13  ;;  %p1529_p9 = scmp.lt.s32.totalorder %s1520_s13, %s1520_s13 }
  0x94   : > { %p1523_p2 = pnand %p1521_p0, %p1814_p8  ;;  %p1530_p5 = por %p1529_p9, %p1528_p7 }
  0x96   : > { %p1524_p4 = pneg %p1523_p2 }
  0x98   : > { %p1531_p10 = pnand %p1530_p5, %p1524_p4 }
  0x9a   : > { %1534 = shalt.err (!%p1531_p10)
}
  0x9b   : > { %1308 = dma.hbm_to_vmem [thread:$0]  (!%p1798_p6), %s2203_s6, 512, %s299_s19, [#allocation12], %s1698_s12, %s1698_s12, %s1699_s14  }
  0x9c   : > { %s1160_s11 = sadd.s32 4294967294, %s1693_s29   ;;  %s40_s21 = sadd.s32 1, %s1689_s28 }
  0x9d   : > { %s49_s2 = sadd.s32 1, %s1681_s26  ;;  %p42_p8 = scmp.ge.s32.totalorder %s40_s21, 2 }
  0x9e   : > { %p56_p1 = scmp.ne.s32.totalorder %s1681_s26, %s1677_s25  ;;  %p57_p3 = scmp.eq.s32.totalorder %s1693_s29, 0 }
  0x9f   : > { %p62_p11 = scmp.ne.s32.totalorder %s1677_s25, %s1673_s24  ;;  %s2248_s21 = smov (%p42_p8, %s40_s21), 0 }
  0xa0   : > { %p1938_p12 = por %p57_p3, %p56_p1  ;;  %p2224_p6 = scmp.eq.s32.totalorder %s1782_s30, 0 }
  0xa1   : > { %s44_s14 = ssub.s32 %s1689_s28, %s2248_s21  ;;  %p221_p0 = scmp.eq.s32.totalorder %s1782_s30, 1 }
  0xa2   : > { %p1944_p13 = por %p2224_p6, %p62_p11  ;;  %p47_p2 = scmp.eq.s32.totalorder %s44_s14, 0 }
  0xa3   : > { %p227_p4 = scmp.eq.s32.totalorder %s1160_s11, 1  ;;  %p1951_p7 = por %p221_p0, %p56_p1 }
  0xa4   : > { %p1325_p9 = scmp.lt.s32.totalorder %s1693_s29, 2  ;;  %s312_s20 = sand.u32 1, %s1681_s26  }
  0xa5   : > { %s2226_s19 = scalar_select %p1951_p7, 1, 0 }
  0xa6   : > { %s1957_s16 = scalar_select %p47_p2, %s1681_s26, %s49_s2  }
  0xa7   : > { %p1959_p5 = por %p227_p4, %p62_p11  ;;  %s1964_s22 = sshll.u32 %s312_s20, 5 }
  0xa8   : > { %s2208_s23 = sshll.u32 %s1689_s28, 9  ;;  %s2228_s0 = sld [smem:[#allocation21_spill]] }
  0xa9   : > { %s2227_s18 = scalar_select %p1959_p5, 1, 0 }
  0xaa   : > { %s316_s17 = scalar_lea.vmem [#allocation2], %s1964_s22  ;;  %p1979_p10 = pnand %p1325_p9, %p1938_p12 }
  0xab   : > { %s325_s15 = sshll.u32 %s316_s17, 4  ;;  %s1983_s2 = scalar_lea.sflag [#allocation3], %s312_s20  ;;  %s1975_s15 = int_to_ptr.vmem [resolvable:$true] %s325_s15 }
  0xac   : > { %p1537_p1 = pneg %p1979_p10 }
  0xae   : > { %s1972_s13 = scalar_lea.hbm %s2228_s0, %s2208_s23  ;;  %s1540_s7 = scalar_lea.hbm %s2228_s0, 1024 }
  0xaf   : > { %s1535_s14 = scalar_lea.hbm %s1972_s13, 512  ;;  %p1541_p12 = scmp.lt.u32.totalorder %s1972_s13, %s2228_s0 }
  0xb0   : > { %p1536_p8 = scmp.ne.s32.totalorder %s1972_s13, %s1535_s14  ;;  %p1542_p6 = scmp.lt.u32.totalorder %s1540_s7, %s1535_s14 }
  0xb1   : > { %p1544_p2 = scmp.lt.u32.totalorder %s1535_s14, %s1972_s13 }
  0xb2   : > { %p1538_p3 = pnand %p1537_p1, %p1536_p8  ;;  %p1543_p0 = por %p1542_p6, %p1541_p12 }
  0xb4   : > { %p1539_p11 = pneg %p1538_p3  ;;  %p1545_p4 = por %p1544_p2, %p1543_p0 }
  0xb6   : > { %p1546_p9 = pnand %p1545_p4, %p1539_p11 }
  0xb8   : > { %1549 = shalt.err (!%p1546_p9)
}
  0xb9   : > { %s1550_s20 = scalar_lea.vmem %s1975_s15, 512  ;;  %s1702_s9 = smov [#allocation2]  }
  0xba   : > { %p1551_p8 = scmp.ne.s32.totalorder %s1975_s15, %s1550_s20  ;;  %s1555_s10 = sshll.u32 %s1702_s9, 4  ;;  %s1556_s10 = int_to_ptr.vmem [resolvable:$false] %s1555_s10 }
  0xbb   : > { %s1557_s23 = scalar_lea.vmem %s1556_s10, 1024  ;;  %p1558_p7 = scmp.lt.s32.totalorder %s1975_s15, %s1556_s10 }
  0xbc   : > { %p1553_p3 = pnand %p1551_p8, %p1537_p1  ;;  %p1559_p12 = scmp.lt.s32.totalorder %s1557_s23, %s1550_s20 }
  0xbe   : > { %p1554_p5 = pneg %p1553_p3  ;;  %p1560_p6 = por %p1559_p12, %p1558_p7 }
  0xc0   : > { %p1561_p0 = pnand %p1560_p6, %p1554_p5 }
  0xc2   : > { %1564 = shalt.err (!%p1561_p0)
}
  0xc3   : > { %s1703_s14 = smov 256   ;;  %s1704_s7 = smov 16  }
  0xc4   : > { %1312 = dma.hbm_to_vmem [thread:$0]  (!%p1979_p10), %s1972_s13, 512, %s1975_s15, %s1983_s2, %s1703_s14, %s1703_s14, %s1704_s7  }
  0xc5   : > { %s2230_s17 = sshll.u32 %s1689_s28, 9  ;;  %s339_s23 = scalar_lea.vmem [#allocation5], %s1964_s22 }
  0xc6   : > { %s2019_s10 = scalar_lea.hbm %s2198_s1, %s2230_s17  ;;  %s348_s0 = sshll.u32 %s339_s23, 4  ;;  %s2022_s0 = int_to_ptr.vmem [resolvable:$true] %s348_s0 }
  0xc7   : > { %s335_s3 = sand.u32 1, %s1693_s29   ;;  %s1565_s5 = scalar_lea.hbm %s2019_s10, 512 }
  0xc8   : > { %s2025_s4 = scalar_lea.sflag [#allocation6], %s335_s3  ;;  %p1566_p7 = scmp.ne.s32.totalorder %s2019_s10, %s1565_s5 }
  0xc9   : > { %s1570_s2 = scalar_lea.hbm %s2198_s1, 1024  ;;  %p1571_p2 = scmp.lt.u32.totalorder %s2019_s10, %s2198_s1 }
  0xca   : > { %p1568_p5 = pnand %p1566_p7, %p1537_p1  ;;  %p1572_p4 = scmp.lt.u32.totalorder %s1570_s2, %s1565_s5 }
  0xcb   : > { %p1574_p8 = scmp.lt.u32.totalorder %s1565_s5, %s2019_s10 }
  0xcc   : > { %p1569_p11 = pneg %p1568_p5  ;;  %p1573_p9 = por %p1572_p4, %p1571_p2 }
  0xce   : > { %p1575_p3 = por %p1574_p8, %p1573_p9 }
  0xd0   : > { %p1576_p12 = pnand %p1575_p3, %p1569_p11 }
  0xd2   : > { %1579 = shalt.err (!%p1576_p12)
}
  0xd3   : > { %s1580_s3 = scalar_lea.vmem %s2022_s0, 512  ;;  %s1705_s22 = smov [#allocation5]  }
  0xd4   : > { %p1581_p6 = scmp.ne.s32.totalorder %s2022_s0, %s1580_s3  ;;  %s1585_s9 = sshll.u32 %s1705_s22, 4  ;;  %s1586_s9 = int_to_ptr.vmem [resolvable:$false] %s1585_s9 }
  0xd5   : > { %s1587_s23 = scalar_lea.vmem %s1586_s9, 1024  ;;  %p1588_p5 = scmp.lt.s32.totalorder %s2022_s0, %s1586_s9 }
  0xd6   : > { %p1583_p0 = pnand %p1581_p6, %p1537_p1  ;;  %p1589_p2 = scmp.lt.s32.totalorder %s1587_s23, %s1580_s3 }
  0xd8   : > { %p1584_p7 = pneg %p1583_p0  ;;  %p1590_p4 = por %p1589_p2, %p1588_p5 }
  0xda   : > { %p1591_p9 = pnand %p1590_p4, %p1584_p7 }
  0xdc   : > { %1594 = shalt.err (!%p1591_p9)
}
  0xdd   : > { %1315 = dma.hbm_to_vmem [thread:$0]  (!%p1979_p10), %s2019_s10, 512, %s2022_s0, %s2025_s4, %s1703_s14, %s1703_s14, %s1704_s7  }
  0xde   : > { %p2231_p1 = scmp.ne.s32.totalorder %s2216_s8, 0 }
  0xdf   : > { %s2057_s5 = sand.u32 (!%p2231_p1), 1, %s1677_s25  }
  0xe0   : > { %360 = sbr.rel (%p2231_p1) target bundleno = 980 (0x3d4), region = 48  ;;  %s1175_s13 = sshll.u32 (!%p2231_p1), %s2057_s5, 5 }
  0xe1   : > { %s363_s15 = scalar_lea.sflag (!%p2231_p1), [#allocation3], %s2057_s5  ;;  %s366_s2 = scalar_lea.vmem (!%p2231_p1), [#allocation2], %s1175_s13 }
  0xe7   : > { %1648 = dma.done.wait (%p1944_p13), %s363_s15, 512  }
  0xe8   : > { %1650 = vsyncadd (%p1944_p13), %s363_s15, 4294966784  ;;  %s371_s0 = sand.u32 1, %s1782_s30   ;;  %s375_s8 = scalar_lea.vmem [#allocation5], %s1175_s13 }
  0xe9   : > { %s372_s4 = scalar_lea.sflag [#allocation6], %s371_s0 }
  0xea   : > { %1652 = dma.done.wait (%p1944_p13), %s372_s4, 512  }
  0xeb   : > { %1654 = vsyncadd (%p1944_p13), %s372_s4, 4294966784  ;;  %p2232_p10 = scmp.eq.s32.totalorder %s1782_s30, 0 }
  0xed   : > { %1656 = dma.done.wait (%p2232_p10), [#allocation6], 1024   ;;  %p2233_p11 = pmov %p2232_p10 }
  0xee   : > { %p2234_p8 = pmov %p2232_p10 }
  0xef   : > { %1658 = vsyncadd (%p2233_p11), [#allocation6], 4294966272 }
  0xf0   : > { %1660 = dma.done.wait (%p2234_p8), [#allocation9], 2048   ;;  %p2235_p3 = pmov %p2234_p8 }
  0xf2   : > { %1662 = vsyncadd (%p2235_p3), [#allocation9], 4294965248  ;;  %p2236_p12 = pmov %p2235_p3 }
  0xf3   : > { %p2237_p6 = pmov %p2235_p3 }
  0xf4   : > { %1664 = dma.done.wait (%p2236_p12), [#allocation12], 1536  }
  0xf5   : > { %1666 = vsyncadd (%p2237_p6), [#allocation12], 4294965760  ;;  %v1706_v0 = vmov 0.0   ;;  %v1707_v1 = vmov 0   ;;  %v435_v2 = vld [vmem:[%s366_s2 + $0x8] sm:$0xff]  ;;  %v437_v3 = vld [vmem:[%s366_s2 + $0x18] sm:$0xff] }
  0xf6   : > { %587 = vmatprep.mubr.f32.mxu0 %v1706_v0  ;;  %1393 = vset.pattern.permute.xlu0 %v1707_v1  ;;  %v434_v4 = vld [vmem:[%s366_s2] sm:$0xff]  ;;  %v1211_v5 = vpack.c.bf16 %v437_v3, %v435_v2  ;;  %v436_v6 = vld [vmem:[%s366_s2 + $0x10] sm:$0xff]  ;;  %v439_v7 = vld [vmem:[%s375_s8 + $0x8] sm:$0xff]  ;;  %vm498_vm0 = vcmask 261120   ;;  %vm708_vm1 = vcmask 523264   ;;  %s1182_s30 = sshll.u32 %s2057_s5, 7 }
  0xf7   : > { %1394 = vset.pattern.permute.xlu1 %v1707_v1  ;;  %815 = vmatprep.mubr.f32.mxu1 %v1706_v0  ;;  %v441_v8 = vld [vmem:[%s375_s8 + $0x18] sm:$0xff]  ;;  %v1213_v9 = vpack.c.bf16 %v436_v6, %v434_v4  ;;  %v438_v11 = vld [vmem:[%s375_s8] sm:$0xff]  ;;  %v440_v12 = vld [vmem:[%s375_s8 + $0x10] sm:$0xff]  ;;  %s2116_s12 = scalar_lea.vmem [#allocation14], %s1182_s30  ;;  %s1210_s11 = sshll.u32 %s1685_s27, 11 }
  0xf8   : > { %v1215_v10 = vpack.c.bf16 %v441_v8, %v439_v7  ;;  %1212 = vmatprep.subr.bf16.mxu0 %v1211_v5  ;;  %v1217_v13 = vpack.c.bf16 %v440_v12, %v438_v11  ;;  %v450_v14 = vld [vmem:[#allocation8] sm:$0xff]  ;;  %v452_v15 = vld [vmem:[#allocation8 + $0x10] sm:$0xff]  ;;  %v451_v16 = vld [vmem:[#allocation8 + $0x8] sm:$0xff]  ;;  %s999_s14 = sshll.u32 %s2116_s12, 4  ;;  %s2238_s17 = sld [smem:[#allocation26_spill]]  ;;  %s2146_s14 = int_to_ptr.vmem [resolvable:$true] %s999_s14 }
  0xf9   : > { %1214 = vmatpush1.bf16.msra.mxu0 %v1213_v9  ;;  %460 = vperm.xlu0 %1393, %v450_v14   ;;  %v442_v17 = vld [vmem:[#allocation7] sm:$0xff]  ;;  %v453_v18 = vld [vmem:[#allocation8 + $0x18] sm:$0xff]  ;;  %v443_v20 = vld [vmem:[#allocation7 + $0x8] sm:$0xff]  ;;  %s984_s27 = scalar_lea.sflag [#allocation4], %s2057_s5  ;;  %s1595_s3 = scalar_lea.vmem %s2146_s14, 2048 }
  0xfa   : > { %1216 = vmatprep.subr.bf16.mxu0 %v1215_v10  ;;  %470 = vperm.xlu1 %1394, %v452_v15   ;;  %v454_v19 = vld [vmem:[#allocation8 + $0x20] sm:$0xff]  ;;  %v455_v21 = vld [vmem:[#allocation8 + $0x28] sm:$0xff]  ;;  %v456_v22 = vld [vmem:[#allocation8 + $0x30] sm:$0xff]  ;;  %p1596_p13 = scmp.ne.s32.totalorder %s2146_s14, %s1595_s3  ;;  %p2239_p0 = scmp.ne.s32.totalorder %s2226_s19, 0 }
  0xfb   : > { %v444_v23 = vld [vmem:[#allocation7 + $0x10] sm:$0xff]  ;;  %v457_v24 = vld [vmem:[#allocation8 + $0x38] sm:$0xff]  ;;  %v660_v25 = vld [vmem:[#allocation11] sm:$0xff]  ;;  %s1708_s22 = smov [#allocation14]  }
  0xfc   : > { %v445_v26 = vld [vmem:[#allocation7 + $0x18] sm:$0xff]  ;;  %v661_v27 = vld [vmem:[#allocation11 + $0x8] sm:$0xff]  ;;  %v662_v28 = vld [vmem:[#allocation11 + $0x10] sm:$0xff]  ;;  %p1597_p7 = pnand %p1596_p13, %p2239_p0  ;;  %s1599_s9 = sshll.u32 %s1708_s22, 4  ;;  %s1600_s9 = int_to_ptr.vmem [resolvable:$false] %s1599_s9 }
  0xfd   : > { %1218 = vmatpush1.bf16.msra.mxu0 %v1217_v13  ;;  %465 = vperm.xlu0 %1393, %v451_v16   ;;  %v446_v29 = vld [vmem:[#allocation7 + $0x20] sm:$0xff]  ;;  %v663_v30 = vld [vmem:[#allocation11 + $0x18] sm:$0xff]  ;;  %v447_v32 = vld [vmem:[#allocation7 + $0x28] sm:$0xff]  ;;  %s1601_s23 = scalar_lea.vmem %s1600_s9, 4096  ;;  %p1602_p2 = scmp.lt.s32.totalorder %s2146_s14, %s1600_s9 }
  0xfe   : > { %475 = vperm.xlu1 %1394, %v453_v18   ;;  %v664_v31 = vld [vmem:[#allocation11 + $0x20] sm:$0xff]  ;;  %v665_v33 = vld [vmem:[#allocation11 + $0x28] sm:$0xff]  ;;  %v666_v34 = vld [vmem:[#allocation11 + $0x30] sm:$0xff]  ;;  %s2144_s20 = scalar_lea.hbm %s2238_s17, %s1210_s11  ;;  %p1598_p5 = pneg %p1597_p7 }
  0xff   : > { %v448_v35 = vld [vmem:[#allocation7 + $0x30] sm:$0xff]  ;;  %v667_v36 = vld [vmem:[#allocation11 + $0x38] sm:$0xff]  ;;  %p1603_p4 = scmp.lt.s32.totalorder %s1601_s23, %s1595_s3 }
 0x100   : > { %1183 = vmatmul.mubr.msk.f32.vlgmr.msra.gmra.mrb[0].mxu0 %vm498_vm0, %v442_v17  ;;  %v449_v37 = vld [vmem:[#allocation7 + $0x38] sm:$0xff] }
 0x101   : > { %593 = vmatprep.mubr.f32.mxu0 %v1706_v0  ;;  %480 = vperm.xlu0 %1393, %v454_v19   ;;  %p1604_p9 = por %p1603_p4, %p1602_p2 }
 0x102   : > { %485 = vperm.xlu1 %1394, %v455_v21  }
 0x103   : > { %p1605_p1 = pnand %p1604_p9, %p1598_p5 }
 0x104   : > { %1184 = vmatmul.mubr.msk.f32.gmra.mrb[2].mxu0 %vm498_vm0, %v443_v20 }
 0x105   : > { %599 = vmatprep.mubr.f32.mxu0 %v1706_v0  ;;  %490 = vperm.xlu0 %1393, %v456_v22  }
 0x106   : > { %495 = vperm.xlu1 %1394, %v457_v24  }
 0x108   : > { %1185 = vmatmul.mubr.msk.f32.gmra.mrb[4].mxu0 %vm498_vm0, %v444_v23 }
 0x109   : > { %605 = vmatprep.mubr.f32.mxu0 %v1706_v0  ;;  %670 = vperm.xlu0 %1393, %v660_v25  }
 0x10a   : > { %675 = vperm.xlu1 %1394, %v661_v27  }
 0x10c   : > { %1186 = vmatmul.mubr.msk.f32.gmra.mrb[6].mxu0 %vm498_vm0, %v445_v26 }
 0x10d   : > { %611 = vmatprep.mubr.f32.mxu0 %v1706_v0  ;;  %680 = vperm.xlu0 %1393, %v662_v28  }
 0x10e   : > { %685 = vperm.xlu1 %1394, %v663_v30  }
 0x110   : > { %1187 = vmatmul.mubr.msk.f32.gmra.mrb[8].mxu0 %vm498_vm0, %v446_v29 }
 0x111   : > { %617 = vmatprep.mubr.f32.mxu0 %v1706_v0  ;;  %690 = vperm.xlu0 %1393, %v664_v31  }
 0x112   : > { %695 = vperm.xlu1 %1394, %v665_v33  }
 0x114   : > { %1188 = vmatmul.mubr.msk.f32.gmra.mrb[10].mxu0 %vm498_vm0, %v447_v32 }
 0x115   : > { %623 = vmatprep.mubr.f32.mxu0 %v1706_v0  ;;  %700 = vperm.xlu0 %1393, %v666_v34  }
 0x116   : > { %705 = vperm.xlu1 %1394, %v667_v36  }
 0x118   : > { %1189 = vmatmul.mubr.msk.f32.gmra.mrb[12].mxu0 %vm498_vm0, %v448_v35 }
 0x119   : > { %629 = vmatprep.mubr.f32.mxu0 %v1706_v0 }
 0x11c   : > { %1190 = vmatmul.mubr.msk.f32.gmra.mrb[14].mxu0 %vm498_vm0, %v449_v37 }
 0x11d   : > { %797 = vmatprep.mubr.f32.mxu0 %v1706_v0 }
 0x178   : > { %v461_v38 = vpop.permute.xlu0 %460 }
 0x179   : > { %v471_v47 = vpop.permute.xlu1 %470 }
 0x17c   : > { %v466_v42 = vpop.permute.xlu0 %465 }
 0x17d   : > { %v476_v58 = vpop.permute.xlu1 %475 }
 0x180   : > { %v481_v8 = vpop.permute.xlu0 %480 }
 0x181   : > { %v486_v11 = vpop.permute.xlu1 %485 }
 0x184   : > { %v491_v24 = vpop.permute.xlu0 %490 }
 0x185   : > { %v496_v27 = vpop.permute.xlu1 %495 }
 0x1d3   : > { %v589_v39 = vpop.f32.mrb[0].mxu0 }
 0x1d4   : > { %v591_v40 = vpop.f32.mrb[1].mxu0  ;;  %v590_v41 = vadd.f32 %v589_v39, %v461_v38  ;;  %v652_v39 = vld [vmem:[#allocation10] sm:$0xff] }
 0x1d5   : > { %v592_v43 = vadd.f32 %v591_v40, %v461_v38  ;;  %v655_v40 = vld [vmem:[#allocation10 + $0x18] sm:$0xff] }
 0x1d6   : > { %v636_v49 = vmax.f32 %v590_v41, 0.0  ;;  %v653_v41 = vld [vmem:[#allocation10 + $0x8] sm:$0xff] }
 0x1d7   : > { %v595_v44 = vpop.f32.mrb[2].mxu0  ;;  %v637_v51 = vmax.f32 %v592_v43, 0.0  ;;  %v656_v43 = vld [vmem:[#allocation10 + $0x20] sm:$0xff] }
 0x1d8   : > { %v596_v45 = vadd.f32 %v595_v44, %v466_v42  ;;  %v597_v46 = vpop.f32.mrb[3].mxu0  ;;  %v657_v44 = vld [vmem:[#allocation10 + $0x28] sm:$0xff] }
 0x1d9   : > { %v598_v48 = vadd.f32 %v597_v46, %v466_v42  ;;  %v654_v42 = vld [vmem:[#allocation10 + $0x10] sm:$0xff]  ;;  %v659_v46 = vld [vmem:[#allocation10 + $0x38] sm:$0xff] }
 0x1da   : > { %v638_v50 = vmax.f32 %v596_v45, 0.0  ;;  %v658_v45 = vld [vmem:[#allocation10 + $0x30] sm:$0xff] }
 0x1db   : > { %v639_v52 = vmax.f32 %v598_v48, 0.0  ;;  %v601_v53 = vpop.f32.mrb[4].mxu0  ;;  %v671_v48 = vpop.permute.xlu0 %670 }
 0x1dc   : > { %v1221_v54 = vpack.c.bf16 %v638_v50, %v636_v49  ;;  %v603_v55 = vpop.f32.mrb[5].mxu0  ;;  %v602_v57 = vadd.f32 %v601_v53, %v471_v47 }
 0x1dd   : > { %v1219_v56 = vpack.c.bf16 %v639_v52, %v637_v51  ;;  %v604_v59 = vadd.f32 %v603_v55, %v471_v47  ;;  %v676_v47 = vpop.permute.xlu1 %675 }
 0x1de   : > { %v640_v1 = vmax.f32 %v602_v57, 0.0 }
 0x1df   : > { %v607_v60 = vpop.f32.mrb[6].mxu0  ;;  %1220 = vmatprep.subr.bf16.mxu0 %v1219_v56  ;;  %1243 = vmatprep.subr.bf16.mxu1 %v1219_v56  ;;  %v641_v3 = vmax.f32 %v604_v59, 0.0 }
 0x1e0   : > { %v608_v61 = vadd.f32 %v607_v60, %v476_v58  ;;  %v609_v62 = vpop.f32.mrb[7].mxu0  ;;  %1222 = vmatpush1.bf16.msra.mxu0 %v1221_v54  ;;  %1247 = vmatpush1.bf16.msra.mxu1 %v1221_v54 }
 0x1e1   : > { %v610_v63 = vadd.f32 %v609_v62, %v476_v58  ;;  %v686_v49 = vpop.permute.xlu1 %685 }
 0x1e2   : > { %v642_v2 = vmax.f32 %v608_v61, 0.0 }
 0x1e3   : > { %v643_v4 = vmax.f32 %v610_v63, 0.0  ;;  %v613_v5 = vpop.f32.mrb[8].mxu0 }
 0x1e4   : > { %v1225_v6 = vpack.c.bf16 %v642_v2, %v640_v1  ;;  %v615_v7 = vpop.f32.mrb[9].mxu0  ;;  %v614_v10 = vadd.f32 %v613_v5, %v481_v8  ;;  %v681_v1 = vpop.permute.xlu0 %680 }
 0x1e5   : > { %v1223_v9 = vpack.c.bf16 %v643_v4, %v641_v3  ;;  %v616_v12 = vadd.f32 %v615_v7, %v481_v8 }
 0x1e6   : > { %v644_v17 = vmax.f32 %v614_v10, 0.0 }
 0x1e7   : > { %v619_v13 = vpop.f32.mrb[10].mxu0  ;;  %1224 = vmatprep.subr.bf16.mxu0 %v1223_v9  ;;  %1244 = vmatprep.subr.bf16.mxu1 %v1223_v9  ;;  %v645_v19 = vmax.f32 %v616_v12, 0.0 }
 0x1e8   : > { %v620_v14 = vadd.f32 %v619_v13, %v486_v11  ;;  %v621_v15 = vpop.f32.mrb[11].mxu0  ;;  %1226 = vmatpush1.bf16.msra.mxu0 %v1225_v6  ;;  %1248 = vmatpush1.bf16.msra.mxu1 %v1225_v6 }
 0x1e9   : > { %v622_v16 = vadd.f32 %v621_v15, %v486_v11 }
 0x1ea   : > { %v646_v18 = vmax.f32 %v620_v14, 0.0 }
 0x1eb   : > { %v647_v20 = vmax.f32 %v622_v16, 0.0  ;;  %v625_v21 = vpop.f32.mrb[12].mxu0  ;;  %v854_v16 = vld [vmem:[#allocation13] sm:$0xff] }
 0x1ec   : > { %v1229_v22 = vpack.c.bf16 %v646_v18, %v644_v17  ;;  %v627_v23 = vpop.f32.mrb[13].mxu0  ;;  %v626_v26 = vadd.f32 %v625_v21, %v491_v24  ;;  %v855_v17 = vld [vmem:[#allocation13 + $0x8] sm:$0xff]  ;;  %v856_v18 = vld [vmem:[#allocation13 + $0x10] sm:$0xff] }
 0x1ed   : > { %v1227_v25 = vpack.c.bf16 %v647_v20, %v645_v19  ;;  %v628_v28 = vadd.f32 %v627_v23, %v491_v24  ;;  %v857_v19 = vld [vmem:[#allocation13 + $0x18] sm:$0xff]  ;;  %v691_v20 = vpop.permute.xlu0 %690 }
 0x1ee   : > { %v648_v33 = vmax.f32 %v626_v26, 0.0 }
 0x1ef   : > { %v631_v29 = vpop.f32.mrb[14].mxu0  ;;  %1228 = vmatprep.subr.bf16.mxu0 %v1227_v25  ;;  %1245 = vmatprep.subr.bf16.mxu1 %v1227_v25  ;;  %v649_v35 = vmax.f32 %v628_v28, 0.0  ;;  %v696_v25 = vpop.permute.xlu1 %695 }
 0x1f0   : > { %v632_v30 = vadd.f32 %v631_v29, %v496_v27  ;;  %v633_v31 = vpop.f32.mrb[15].mxu0  ;;  %1230 = vmatpush1.bf16.msra.mxu0 %v1229_v22  ;;  %1249 = vmatpush1.bf16.msra.mxu1 %v1229_v22 }
 0x1f1   : > { %v634_v32 = vadd.f32 %v633_v31, %v496_v27  ;;  %v701_v29 = vpop.permute.xlu0 %700 }
 0x1f2   : > { %v650_v34 = vmax.f32 %v632_v30, 0.0 }
 0x1f3   : > { %v651_v36 = vmax.f32 %v634_v32, 0.0 }
 0x1f4   : > { %v1233_v37 = vpack.c.bf16 %v650_v34, %v648_v33  ;;  %v706_v34 = vpop.permute.xlu1 %705 }
 0x1f5   : > { %v1231_v38 = vpack.c.bf16 %v651_v36, %v649_v35 }
 0x1f7   : > { %1232 = vmatprep.subr.bf16.mxu0 %v1231_v38  ;;  %1246 = vmatprep.subr.bf16.mxu1 %v1231_v38 }
 0x1f8   : > { %1234 = vmatpush1.bf16.msra.mxu0 %v1233_v37  ;;  %1250 = vmatpush1.bf16.msra.mxu1 %v1233_v37 }
 0x1fb   : > { %1191 = vmatmul.mubr.msk.f32.vlgmr.msra.gmra.mrb[16].mxu0 %vm708_vm1, %v652_v39  ;;  %1194 = vmatmul.mubr.msk.f32.vlgmr.msra.gmra.mrb[0].mxu1 %vm708_vm1, %v655_v40 }
 0x1fc   : > { %803 = vmatprep.mubr.f32.mxu0 %v1706_v0  ;;  %821 = vmatprep.mubr.f32.mxu1 %v1706_v0 }
 0x1ff   : > { %1192 = vmatmul.mubr.msk.f32.gmra.mrb[18].mxu0 %vm708_vm1, %v653_v41  ;;  %1195 = vmatmul.mubr.msk.f32.gmra.mrb[2].mxu1 %vm708_vm1, %v656_v43 }
 0x200   : > { %809 = vmatprep.mubr.f32.mxu0 %v1706_v0  ;;  %827 = vmatprep.mubr.f32.mxu1 %v1706_v0 }
 0x203   : > { %1193 = vmatmul.mubr.msk.f32.gmra.mrb[20].mxu0 %vm708_vm1, %v654_v42  ;;  %1196 = vmatmul.mubr.msk.f32.gmra.mrb[4].mxu1 %vm708_vm1, %v657_v44 }
 0x204   : > { %833 = vmatprep.mubr.f32.mxu1 %v1706_v0 }
 0x207   : > { %1197 = vmatmul.mubr.msk.f32.gmra.mrb[6].mxu1 %vm708_vm1, %v658_v45 }
 0x208   : > { %839 = vmatprep.mubr.f32.mxu1 %v1706_v0 }
 0x20b   : > { %1198 = vmatmul.mubr.msk.f32.gmra.mrb[8].mxu1 %vm708_vm1, %v659_v46 }
 0x20c   : > { %934 = vmatprep.mubr.f32.mxu1 %v1706_v0 }
 0x2ce   : > { %v799_v50 = vpop.f32.mrb[16].mxu0  ;;  %v817_v51 = vpop.f32.mrb[0].mxu1 }
 0x2cf   : > { %v800_v52 = vadd.f32 %v799_v50, %v671_v48  ;;  %v818_v53 = vadd.f32 %v817_v51, %v686_v49  ;;  %v801_v54 = vpop.f32.mrb[17].mxu0  ;;  %v819_v55 = vpop.f32.mrb[1].mxu1 }
 0x2d0   : > { %v802_v56 = vadd.f32 %v801_v54, %v671_v48  ;;  %v820_v57 = vadd.f32 %v819_v55, %v686_v49 }
 0x2d1   : > { %967 = vst [vmem:[%s2116_s12] sm:$0xff] %v800_v52  ;;  %973 = vst [vmem:[%s2116_s12 + $0x30] sm:$0xff] %v818_v53  ;;  %v846_v62 = vmax.f32 %v800_v52, 0.0  ;;  %v852_v10 = vmax.f32 %v818_v53, 0.0 }
 0x2d2   : > { %968 = vst [vmem:[%s2116_s12 + $0x8] sm:$0xff] %v802_v56  ;;  %974 = vst [vmem:[%s2116_s12 + $0x38] sm:$0xff] %v820_v57  ;;  %v805_v58 = vpop.f32.mrb[18].mxu0  ;;  %v847_v2 = vmax.f32 %v802_v56, 0.0  ;;  %v853_v12 = vmax.f32 %v820_v57, 0.0 }
 0x2d3   : > { %v806_v59 = vadd.f32 %v805_v58, %v676_v47  ;;  %v807_v60 = vpop.f32.mrb[19].mxu0 }
 0x2d4   : > { %v808_v61 = vadd.f32 %v807_v60, %v676_v47 }
 0x2d5   : > { %v848_v63 = vmax.f32 %v806_v59, 0.0  ;;  %969 = vst [vmem:[%s2116_s12 + $0x10] sm:$0xff] %v806_v59 }
 0x2d6   : > { %v849_v3 = vmax.f32 %v808_v61, 0.0  ;;  %970 = vst [vmem:[%s2116_s12 + $0x18] sm:$0xff] %v808_v61  ;;  %v811_v4 = vpop.f32.mrb[20].mxu0 }
 0x2d7   : > { %v1237_v5 = vpack.c.bf16 %v848_v63, %v846_v62  ;;  %v812_v6 = vadd.f32 %v811_v4, %v681_v1  ;;  %v813_v7 = vpop.f32.mrb[21].mxu0 }
 0x2d8   : > { %v814_v8 = vadd.f32 %v813_v7, %v681_v1  ;;  %v1235_v9 = vpack.c.bf16 %v849_v3, %v847_v2 }
 0x2d9   : > { %v850_v11 = vmax.f32 %v812_v6, 0.0  ;;  %971 = vst [vmem:[%s2116_s12 + $0x20] sm:$0xff] %v812_v6 }
 0x2da   : > { %v851_v13 = vmax.f32 %v814_v8, 0.0  ;;  %972 = vst [vmem:[%s2116_s12 + $0x28] sm:$0xff] %v814_v8  ;;  %1236 = vmatprep.subr.bf16.mxu1 %v1235_v9 }
 0x2db   : > { %v1241_v14 = vpack.c.bf16 %v852_v10, %v850_v11  ;;  %1238 = vmatpush1.bf16.msra.mxu1 %v1237_v5 }
 0x2dc   : > { %v1239_v15 = vpack.c.bf16 %v853_v12, %v851_v13 }
 0x2de   : > { %1240 = vmatprep.subr.bf16.mxu1 %v1239_v15 }
 0x2df   : > { %1242 = vmatpush1.bf16.msra.mxu1 %v1241_v14 }
 0x2e2   : > { %1199 = vmatmul.mubr.msk.f32.vlgmr.msra.gmra.mrb[2].mxu1 %vm498_vm0, %v854_v16 }
 0x2e3   : > { %940 = vmatprep.mubr.f32.mxu1 %v1706_v0 }
 0x2e6   : > { %1200 = vmatmul.mubr.msk.f32.gmra.mrb[4].mxu1 %vm498_vm0, %v855_v17 }
 0x2e7   : > { %946 = vmatprep.mubr.f32.mxu1 %v1706_v0 }
 0x2ea   : > { %1201 = vmatmul.mubr.msk.f32.gmra.mrb[6].mxu1 %vm498_vm0, %v856_v18 }
 0x2eb   : > { %952 = vmatprep.mubr.f32.mxu1 %v1706_v0 }
 0x2ee   : > { %1202 = vmatmul.mubr.msk.f32.gmra.mrb[8].mxu1 %vm498_vm0, %v857_v19 }
 0x3b5   : > { %v936_v21 = vpop.f32.mrb[2].mxu1 }
 0x3b6   : > { %v1251_v22 = vadd.f32 %v936_v21, %v691_v20  ;;  %v938_v23 = vpop.f32.mrb[3].mxu1 }
 0x3b7   : > { %v1252_v24 = vadd.f32 %v938_v23, %v691_v20 }
 0x3b8   : > { %975 = vst [vmem:[%s2116_s12 + $0x40] sm:$0xff] %v1251_v22 }
 0x3b9   : > { %976 = vst [vmem:[%s2116_s12 + $0x48] sm:$0xff] %v1252_v24  ;;  %v942_v26 = vpop.f32.mrb[4].mxu1 }
 0x3ba   : > { %v1253_v27 = vadd.f32 %v942_v26, %v696_v25  ;;  %v944_v28 = vpop.f32.mrb[5].mxu1 }
 0x3bb   : > { %v1254_v0 = vadd.f32 %v944_v28, %v696_v25 }
 0x3bc   : > { %977 = vst [vmem:[%s2116_s12 + $0x50] sm:$0xff] %v1253_v27 }
 0x3bd   : > { %978 = vst [vmem:[%s2116_s12 + $0x58] sm:$0xff] %v1254_v0  ;;  %v948_v30 = vpop.f32.mrb[6].mxu1 }
 0x3be   : > { %v1255_v31 = vadd.f32 %v948_v30, %v701_v29  ;;  %v950_v32 = vpop.f32.mrb[7].mxu1 }
 0x3bf   : > { %v1256_v33 = vadd.f32 %v950_v32, %v701_v29 }
 0x3c0   : > { %979 = vst [vmem:[%s2116_s12 + $0x60] sm:$0xff] %v1255_v31 }
 0x3c1   : > { %980 = vst [vmem:[%s2116_s12 + $0x68] sm:$0xff] %v1256_v33  ;;  %v954_v35 = vpop.f32.mrb[8].mxu1 }
 0x3c2   : > { %v1257_v36 = vadd.f32 %v954_v35, %v706_v34  ;;  %v956_v37 = vpop.f32.mrb[9].mxu1 }
 0x3c3   : > { %v1258_v38 = vadd.f32 %v956_v37, %v706_v34 }
 0x3c4   : > { %981 = vst [vmem:[%s2116_s12 + $0x70] sm:$0xff] %v1257_v36 }
 0x3c5   : > { %982 = vst [vmem:[%s2116_s12 + $0x78] sm:$0xff] %v1258_v38 }
 0x3c6   : > { %1608 = shalt.err (!%p1605_p1)
}
 0x3c7   : > { %s1609_s13 = scalar_lea.hbm %s2144_s20, 2048  ;;  %s1613_s0 = scalar_lea.hbm %s2238_s17, 4096 }
 0x3c8   : > { %p1610_p10 = scmp.ne.s32.totalorder %s2144_s20, %s1609_s13  ;;  %p1614_p3 = scmp.lt.u32.totalorder %s2144_s20, %s2238_s17 }
 0x3c9   : > { %p1615_p12 = scmp.lt.u32.totalorder %s1613_s0, %s1609_s13  ;;  %p1617_p13 = scmp.lt.u32.totalorder %s1609_s13, %s2144_s20 }
 0x3ca   : > { %p1611_p11 = pnand %p1610_p10, %p2239_p0 }
 0x3cb   : > { %p1616_p6 = por %p1615_p12, %p1614_p3 }
 0x3cc   : > { %p1612_p8 = pneg %p1611_p11 }
 0x3cd   : > { %p1618_p7 = por %p1617_p13, %p1616_p6 }
 0x3cf   : > { %p1619_p5 = pnand %p1618_p7, %p1612_p8 }
 0x3d1   : > { %1622 = shalt.err (!%p1619_p5)
}
 0x3d2   : > { %s1709_s30 = smov 256   ;;  %s1710_s12 = smov 16  }
 0x3d3   : > { %1291 = dma.vmem_to_hbm [thread:$0]  (%p2239_p0), %s2146_s14, 2048, %s2144_s20, %s984_s27, %s1709_s30, %s1709_s30, %s1710_s12  }
 0x3d4 PF: > { %s1014_s11 = sand.u32 1, %s1673_s24   ;;  %p2240_p2 = scmp.ne.s32.totalorder %s2227_s18, 0 }
 0x3d5   : > { %p2241_p4 = scmp.ge.s32.totalorder %s1693_s29, 2  ;;  %s1015_s7 = scalar_lea.sflag [#allocation4], %s1014_s11 }
 0x3d7   : > { %p1317_p9 = pnand %p2241_p4, %p2240_p2 }
 0x3d9   : > { %1668 = dma.done.wait (!%p1317_p9), %s1015_s7, 2048  }
 0x3da   : > { %1670 = vsyncadd (!%p1317_p9), %s1015_s7, 4294965248  ;;  %s28_s29 = sadd.s32 1, %s1693_s29   ;;  %s2242_s24 = smov %s1677_s25 }
 0x3db   : > { %p25_p1 = scmp.ge.s32.totalorder %s28_s29, 4   ;;  %s2243_s25 = smov %s1681_s26 }
 0x3dc   : > { %s2244_s26 = smov %s1957_s16  ;;  %s2245_s27 = smov %s1689_s28 }
 0x3dd   : > { %s2246_s28 = smov %s2248_s21  ;;  %27 = sbr.rel (!%p25_p1) target bundleno = 17 (0x11), region = 126 }
 0x3e4   :  { %1020 = vsyncpa [#allocation3], 1 }
 0x3e5   :  { %1022 = vsyncpa [#allocation3 + $0x1], 1 }
 0x3e6   :  { %1023 = vsyncpa [#allocation6], 1 }
 0x3e7   :  { %1025 = vsyncpa [#allocation6 + $0x1], 1 }
 0x3e8   :  { %1026 = vsyncpa [#allocation9], 1 }
 0x3e9   :  { %1027 = vsyncpa [#allocation12], 1 }
 0x3ea   :  { %1028 = vsyncpa [#allocation4], 1 }
 0x3eb   :  { %1030 = vsyncpa [#allocation4 + $0x1], 1 }

</bundles_post_ra>
